<compile_context>
chip_gen: v6e
topology: v6e:2x2x1
jax: 0.10.0
libtpu: 0.0.40
codegen_flags: <defaults>
</compile_context>

<pallas_src>
import functools

import jax
import jax.numpy as jnp
from jax.experimental import pallas as pl
from jax.experimental.pallas import tpu as pltpu

NEG_SLOPE = 0.01   # nn.LeakyReLU default
BN_EPS = 1e-5      # nn.BatchNorm1d default
HIDDEN = 32
OUT_DIM = 3        # 2 continuous + 1 binary, fused head


def actor_kernel(x_ref, w1_ref, w2_ref, wout_ref, p_ref, out_ref):
    x = x_ref[...]                  # (B, in_dim) -- native layout, no transpose
    batch = x.shape[0]              # static at trace time
    inv_b = 1.0 / batch

    # Packed per-feature parameters: one (32, 8) array, one DMA.
    # cols: [b1, gamma1, beta1, b2, gamma2, beta2, head_bias(3 rows used), 0]
    b1, g1, be1 = p_ref[:, 0:1], p_ref[:, 1:2], p_ref[:, 2:3]
    b2, g2, be2 = p_ref[:, 3:4], p_ref[:, 4:5], p_ref[:, 5:6]
    b_out = p_ref[0:OUT_DIM, 6:7]   # (3, 1)

    def bn_leaky(h, b, g, be):
        # h: (32, B) pre-bias linear output (batch on the lane axis).
        # Static Python branch on the static batch size -- mirrors PyTorch's
        # `if x.size(0) > 1`.
        if batch > 1:
            # The linear bias cancels exactly under the BN mean subtraction,
            # so it is never added on this path.
            s = jnp.sum(h, axis=1, keepdims=True)        # (32, 1)
            ss = jnp.sum(h * h, axis=1, keepdims=True)   # (32, 1)
            mean = s * inv_b
            var = jnp.maximum(ss * inv_b - mean * mean, 0.0)   # biased variance
            a = g * jax.lax.rsqrt(var + BN_EPS)          # (32, 1), EUP rsqrt
            c = be - mean * a                            # (32, 1)
            h = h * a + c                                # single mul+add per elem
        else:
            h = h + b                                    # no BN when batch == 1
        # LeakyReLU(negative_slope=0.01): max-form, one VALU op.
        return jnp.maximum(h, NEG_SLOPE * h)

    # Layer 1: contract on x's last dim -> (32, B) without materializing x.T.
    h1 = jax.lax.dot_general(
        w1_ref[...], x,
        dimension_numbers=(((1,), (1,)), ((), ())),
        preferred_element_type=jnp.float32)
    h1 = bn_leaky(h1, b1, g1, be1)

    # Layer 2: W2 (32, 32) @ h1 (32, B) -> (32, B).
    h2 = jnp.dot(w2_ref[...], h1, preferred_element_type=jnp.float32)
    h2 = bn_leaky(h2, b2, g2, be2)

    # Fused heads: (3, 32) @ (32, B) -> (3, B); rows 0-1 continuous, row 2 binary.
    logits = jnp.dot(wout_ref[...], h2, preferred_element_type=jnp.float32) + b_out
    out_ref[...] = jax.nn.sigmoid(logits)


def _pad(n, m):
    return -(-n // m) * m


def _padded_bytes(rows, cols, dtype_bytes=4):
    # f32 VMEM tiles pad the last dim to 128 lanes and the second-last to 8 sublanes.
    return dtype_bytes * _pad(rows, 8) * _pad(cols, 128)


@jax.jit
def actor_forward(x, params):
    """x: (B, input_dims) float32. params: (w1, w2, w_out, packed) from init_params.

    Returns (continuous_actions (B, 2), binary_action (B, 1)), both sigmoid-ed,
    matching ActorNetwork.forward.
    """
    w1, w2, w_out, packed = params
    B, in_dim = x.shape

    flops = 2 * B * (in_dim * HIDDEN + HIDDEN * HIDDEN + HIDDEN * OUT_DIM) \
        + 10 * B * HIDDEN
    transcendentals = OUT_DIM * B + 2 * HIDDEN           # sigmoids + BN rsqrt
    bytes_accessed = 4 * (B * in_dim + HIDDEN * in_dim + HIDDEN * HIDDEN
                          + OUT_DIM * HIDDEN + HIDDEN * 8 + OUT_DIM * B)

    # Right-sized VMEM budget: padded inputs/outputs + intermediates, 4x headroom.
    vmem_bytes = (_padded_bytes(B, in_dim) + _padded_bytes(HIDDEN, in_dim)
                  + _padded_bytes(HIDDEN, HIDDEN) + _padded_bytes(OUT_DIM, HIDDEN)
                  + _padded_bytes(HIDDEN, 8) + _padded_bytes(OUT_DIM, B)
                  + 3 * _padded_bytes(HIDDEN, B))
    vmem_limit = int(max(1 << 20, 4 * vmem_bytes))

    out_t = pl.pallas_call(
        actor_kernel,
        out_shape=jax.ShapeDtypeStruct((OUT_DIM, B), jnp.float32),
        in_specs=[pl.BlockSpec(memory_space=pltpu.MemorySpace.VMEM)] * 5,
        out_specs=pl.BlockSpec(memory_space=pltpu.MemorySpace.VMEM),
        compiler_params=pltpu.CompilerParams(vmem_limit_bytes=vmem_limit),
        cost_estimate=pl.CostEstimate(flops=flops,
                                      transcendentals=transcendentals,
                                      bytes_accessed=bytes_accessed),
    )(x, w1, w2, w_out, packed)

    # Fused under the same jit -> a single post-kernel copy; kernel keeps the
    # lane-dense (3, B) store.
    continuous_actions = out_t[0:2, :].T        # (B, 2)
    binary_action = out_t[2:3, :].T             # (B, 1)
    return continuous_actions, binary_action


def init_params(key, input_dims, hidden=HIDDEN):
    """Deterministic init mirroring ActorNetwork.__init__.

    Linear weights: kaiming_normal_ (fan_in, leaky_relu gain sqrt(2)) -> std = sqrt(2/fan_in),
                    stored in PyTorch (out_features, in_features) layout.
    Linear biases:  uniform(-1/sqrt(fan_in), 1/sqrt(fan_in)) (PyTorch default).
    BatchNorm:      weight=1, bias=0.
    Small per-feature vectors are packed into a single (hidden, 8) array.
    """
    def linear(key, fan_in, fan_out):
        kw, kb = jax.random.split(key)
        std = (2.0 / fan_in) ** 0.5
        w = std * jax.random.normal(kw, (fan_out, fan_in), jnp.float32)
        bound = 1.0 / (fan_in ** 0.5)
        b = jax.random.uniform(kb, (fan_out,), jnp.float32, -bound, bound)
        return w, b

    k1, k2, k3, k4 = jax.random.split(key, 4)
    w1, b1 = linear(k1, input_dims, hidden)
    w2, b2 = linear(k2, hidden, hidden)
    w_cont, b_cont = linear(k3, hidden, 2)
    w_bin, b_bin = linear(k4, hidden, 1)
    w_out = jnp.concatenate([w_cont, w_bin], axis=0)      # (3, hidden)

    packed = jnp.zeros((hidden, 8), jnp.float32)
    packed = packed.at[:, 0].set(b1)
    packed = packed.at[:, 1].set(1.0)      # gamma1
    #               col 2 = beta1 = 0
    packed = packed.at[:, 3].set(b2)
    packed = packed.at[:, 4].set(1.0)      # gamma2
    #               col 5 = beta2 = 0
    packed = packed.at[0:2, 6].set(b_cont)
    packed = packed.at[2, 6].set(b_bin[0])
    return (w1, w2, w_out, packed)


if __name__ == "__main__":
    key = jax.random.PRNGKey(0)
    k_x, k_p = jax.random.split(key)

    batch = 8
    input_dims = 16
    x = jax.random.normal(k_x, (batch, input_dims), jnp.float32)

    params = init_params(k_p, input_dims)
    continuous_actions, binary_action = actor_forward(x, params)
    continuous_actions = jax.block_until_ready(continuous_actions)
    binary_action = jax.block_until_ready(binary_action)

    assert continuous_actions.shape == (batch, 2)
    assert binary_action.shape == (batch, 1)
    assert continuous_actions.dtype == jnp.float32
    assert binary_action.dtype == jnp.float32
    assert not bool(jnp.isnan(continuous_actions).any())
    assert not bool(jnp.isnan(binary_action).any())
    # sigmoid outputs must lie in (0, 1)
    assert bool((continuous_actions > 0).all() and (continuous_actions < 1).all())
    assert bool((binary_action > 0).all() and (binary_action < 1).all())

    # Also exercise the batch==1 path (BN skipped, bias applied), matching
    # PyTorch's `if x.size(0) > 1` gate.
    c1, b1_out = actor_forward(x[:1], params)
    c1 = jax.block_until_ready(c1)
    b1_out = jax.block_until_ready(b1_out)
    assert c1.shape == (1, 2) and b1_out.shape == (1, 1)
    assert not bool(jnp.isnan(c1).any()) and not bool(jnp.isnan(b1_out).any())

    print("KERNEL_OK")
</pallas_src>

<mosaic_0001>
module attributes {stable_mosaic.version = 11 : i64} {
  func.func @actor_kernel(%arg0: memref<8x16xf32, #tpu.memory_space<vmem>>, %arg1: memref<32x16xf32, #tpu.memory_space<vmem>>, %arg2: memref<32x32xf32, #tpu.memory_space<vmem>>, %arg3: memref<3x32xf32, #tpu.memory_space<vmem>>, %arg4: memref<32x8xf32, #tpu.memory_space<vmem>>, %arg5: memref<3x8xf32, #tpu.memory_space<vmem>>) attributes {dimension_semantics = [], scalar_prefetch = 0 : i64, scratch_operands = 0 : i64, tpu.core_type = #tpu.core_type<tc>} {
    %c0 = arith.constant 0 : index
    %c0_0 = arith.constant 0 : index
    %0 = vector.load %arg0[%c0, %c0_0] : memref<8x16xf32, #tpu.memory_space<vmem>>, vector<8x16xf32>
    %c0_1 = arith.constant 0 : index
    %c1 = arith.constant 1 : index
    %1 = vector.load %arg4[%c0_1, %c1] : memref<32x8xf32, #tpu.memory_space<vmem>>, vector<32x1xf32>
    %c0_2 = arith.constant 0 : index
    %c2 = arith.constant 2 : index
    %2 = vector.load %arg4[%c0_2, %c2] : memref<32x8xf32, #tpu.memory_space<vmem>>, vector<32x1xf32>
    %c0_3 = arith.constant 0 : index
    %c4 = arith.constant 4 : index
    %3 = vector.load %arg4[%c0_3, %c4] : memref<32x8xf32, #tpu.memory_space<vmem>>, vector<32x1xf32>
    %c0_4 = arith.constant 0 : index
    %c5 = arith.constant 5 : index
    %4 = vector.load %arg4[%c0_4, %c5] : memref<32x8xf32, #tpu.memory_space<vmem>>, vector<32x1xf32>
    %c0_5 = arith.constant 0 : index
    %c6 = arith.constant 6 : index
    %5 = vector.load %arg4[%c0_5, %c6] : memref<32x8xf32, #tpu.memory_space<vmem>>, vector<3x1xf32>
    %c0_6 = arith.constant 0 : index
    %c0_7 = arith.constant 0 : index
    %6 = vector.load %arg1[%c0_6, %c0_7] : memref<32x16xf32, #tpu.memory_space<vmem>>, vector<32x16xf32>
    %cst = arith.constant dense<0.000000e+00> : vector<32x8xf32>
    %7 = tpu.matmul %6, %0, %cst {dimension_numbers = #tpu.dot_dimension_numbers<[1], [1], [0], [0], [0, 0, 1, 0], [], []>} : vector<32x16xf32>, vector<8x16xf32>, vector<32x8xf32> -> vector<32x8xf32>
    %cst_8 = arith.constant dense<0.000000e+00> : vector<32xf32>
    %8 = vector.multi_reduction <add>, %7, %cst_8 [1] : vector<32x8xf32> to vector<32xf32>
    %9 = vector.shape_cast %8 : vector<32xf32> to vector<32x1xf32>
    %10 = arith.mulf %7, %7 : vector<32x8xf32>
    %cst_9 = arith.constant dense<0.000000e+00> : vector<32xf32>
    %11 = vector.multi_reduction <add>, %10, %cst_9 [1] : vector<32x8xf32> to vector<32xf32>
    %12 = vector.shape_cast %11 : vector<32xf32> to vector<32x1xf32>
    %cst_10 = arith.constant 1.250000e-01 : f32
    %13 = vector.broadcast %cst_10 : f32 to vector<32x1xf32>
    %14 = arith.mulf %9, %13 : vector<32x1xf32>
    %cst_11 = arith.constant 1.250000e-01 : f32
    %15 = vector.broadcast %cst_11 : f32 to vector<32x1xf32>
    %16 = arith.mulf %12, %15 : vector<32x1xf32>
    %17 = arith.mulf %14, %14 : vector<32x1xf32>
    %18 = arith.subf %16, %17 : vector<32x1xf32>
    %cst_12 = arith.constant 0.000000e+00 : f32
    %19 = vector.broadcast %cst_12 : f32 to vector<32x1xf32>
    %20 = arith.maximumf %18, %19 : vector<32x1xf32>
    %cst_13 = arith.constant 9.99999974E-6 : f32
    %21 = vector.broadcast %cst_13 : f32 to vector<32x1xf32>
    %22 = arith.addf %20, %21 : vector<32x1xf32>
    %23 = math.rsqrt %22 : vector<32x1xf32>
    %24 = arith.mulf %1, %23 : vector<32x1xf32>
    %25 = arith.mulf %14, %24 : vector<32x1xf32>
    %26 = arith.subf %2, %25 : vector<32x1xf32>
    %27 = vector.broadcast %24 : vector<32x1xf32> to vector<32x8xf32>
    %28 = arith.mulf %7, %27 : vector<32x8xf32>
    %29 = vector.broadcast %26 : vector<32x1xf32> to vector<32x8xf32>
    %30 = arith.addf %28, %29 : vector<32x8xf32>
    %cst_14 = arith.constant 0.00999999977 : f32
    %31 = vector.broadcast %cst_14 : f32 to vector<32x8xf32>
    %32 = arith.mulf %31, %30 : vector<32x8xf32>
    %33 = arith.maximumf %30, %32 : vector<32x8xf32>
    %c0_15 = arith.constant 0 : index
    %c0_16 = arith.constant 0 : index
    %34 = vector.load %arg2[%c0_15, %c0_16] : memref<32x32xf32, #tpu.memory_space<vmem>>, vector<32x32xf32>
    %cst_17 = arith.constant dense<0.000000e+00> : vector<32x8xf32>
    %35 = tpu.matmul %34, %33, %cst_17 {dimension_numbers = #tpu.dot_dimension_numbers<[1], [0], [0], [1], [0, 0, 1, 1], [], []>} : vector<32x32xf32>, vector<32x8xf32>, vector<32x8xf32> -> vector<32x8xf32>
    %cst_18 = arith.constant dense<0.000000e+00> : vector<32xf32>
    %36 = vector.multi_reduction <add>, %35, %cst_18 [1] : vector<32x8xf32> to vector<32xf32>
    %37 = vector.shape_cast %36 : vector<32xf32> to vector<32x1xf32>
    %38 = arith.mulf %35, %35 : vector<32x8xf32>
    %cst_19 = arith.constant dense<0.000000e+00> : vector<32xf32>
    %39 = vector.multi_reduction <add>, %38, %cst_19 [1] : vector<32x8xf32> to vector<32xf32>
    %40 = vector.shape_cast %39 : vector<32xf32> to vector<32x1xf32>
    %cst_20 = arith.constant 1.250000e-01 : f32
    %41 = vector.broadcast %cst_20 : f32 to vector<32x1xf32>
    %42 = arith.mulf %37, %41 : vector<32x1xf32>
    %cst_21 = arith.constant 1.250000e-01 : f32
    %43 = vector.broadcast %cst_21 : f32 to vector<32x1xf32>
    %44 = arith.mulf %40, %43 : vector<32x1xf32>
    %45 = arith.mulf %42, %42 : vector<32x1xf32>
    %46 = arith.subf %44, %45 : vector<32x1xf32>
    %cst_22 = arith.constant 0.000000e+00 : f32
    %47 = vector.broadcast %cst_22 : f32 to vector<32x1xf32>
    %48 = arith.maximumf %46, %47 : vector<32x1xf32>
    %cst_23 = arith.constant 9.99999974E-6 : f32
    %49 = vector.broadcast %cst_23 : f32 to vector<32x1xf32>
    %50 = arith.addf %48, %49 : vector<32x1xf32>
    %51 = math.rsqrt %50 : vector<32x1xf32>
    %52 = arith.mulf %3, %51 : vector<32x1xf32>
    %53 = arith.mulf %42, %52 : vector<32x1xf32>
    %54 = arith.subf %4, %53 : vector<32x1xf32>
    %55 = vector.broadcast %52 : vector<32x1xf32> to vector<32x8xf32>
    %56 = arith.mulf %35, %55 : vector<32x8xf32>
    %57 = vector.broadcast %54 : vector<32x1xf32> to vector<32x8xf32>
    %58 = arith.addf %56, %57 : vector<32x8xf32>
    %cst_24 = arith.constant 0.00999999977 : f32
    %59 = vector.broadcast %cst_24 : f32 to vector<32x8xf32>
    %60 = arith.mulf %59, %58 : vector<32x8xf32>
    %61 = arith.maximumf %58, %60 : vector<32x8xf32>
    %c0_25 = arith.constant 0 : index
    %c0_26 = arith.constant 0 : index
    %62 = vector.load %arg3[%c0_25, %c0_26] : memref<3x32xf32, #tpu.memory_space<vmem>>, vector<3x32xf32>
    %cst_27 = arith.constant dense<0.000000e+00> : vector<3x8xf32>
    %63 = tpu.matmul %62, %61, %cst_27 {dimension_numbers = #tpu.dot_dimension_numbers<[1], [0], [0], [1], [0, 0, 1, 1], [], []>} : vector<3x32xf32>, vector<32x8xf32>, vector<3x8xf32> -> vector<3x8xf32>
    %64 = vector.broadcast %5 : vector<3x1xf32> to vector<3x8xf32>
    %65 = arith.addf %63, %64 : vector<3x8xf32>
    %66 = arith.negf %65 : vector<3x8xf32>
    %67 = math.exp %66 : vector<3x8xf32>
    %cst_28 = arith.constant 1.000000e+00 : f32
    %68 = vector.broadcast %cst_28 : f32 to vector<3x8xf32>
    %69 = arith.addf %68, %67 : vector<3x8xf32>
    %70 = arith.divf %68, %69 : vector<3x8xf32>
    %c0_29 = arith.constant 0 : index
    %c0_30 = arith.constant 0 : index
    %71 = vector.load %arg5[%c0_29, %c0_30] : memref<3x8xf32, #tpu.memory_space<vmem>>, vector<3x8xf32>
    tpu.vector_store %arg5[%c0_29, %c0_30], %70 {strides = array<i32>} : memref<3x8xf32, #tpu.memory_space<vmem>>, vector<3x8xf32>,
    return
  }
}

</mosaic_0001>

<bundles_post_ra>
// kernel: actor_forward.1
= control target key start
LH: loop header
LB: loop body
LE: loop exit
PB: predicated region body
PF: predicated region fallthrough
CT: control target
= control target key end

     0   :  { %vm30_vm0 = vcmask 130048   ;;  %vm131_vm1 = vcmask 64512   ;;  %v705_v21 = vmov 1   ;;  %s706_s28 = smov 1   ;;  %vm276_vm2 = vcmask 261120   ;;  %s892_s0 = inlined_call_operand.vmem [shape: f32[8,16], index: 0, kind: input, shape index: {}]   ;;  %s893_s1 = inlined_call_operand.vmem [shape: f32[32,16], index: 1, kind: input, shape index: {}]   ;;  %s894_s4 = inlined_call_operand.vmem [shape: f32[32,8], index: 4, kind: input, shape index: {}]   ;;  %s895_s2 = inlined_call_operand.vmem [shape: f32[32,32], index: 2, kind: input, shape index: {}]   ;;  %s896_s3 = inlined_call_operand.vmem [shape: f32[3,32], index: 3, kind: input, shape index: {}]   ;;  %s897_s5 = inlined_call_operand.vmem [shape: f32[3,8], index: 5, kind: output, shape index: {}]  }
   0x1   :  { %v20_v0 = vld [vmem:[%s892_s0] sm:$0xff]  ;;  %v27_v2 = vld [vmem:[%s893_s1 + $0x8] sm:$0xff]  ;;  %v28_v3 = vld [vmem:[%s893_s1 + $0x10] sm:$0xff]  ;;  %675 = vset.pattern.permute.xlu0 %v705_v21  ;;  %676 = vset.pattern.permute.xlu1 %v705_v21  ;;  %vm711_vm3 = vmmov 0   ;;  %vm599_vm4 = vcmask 59392  }
   0x2   :  { %v26_v1 = vld [vmem:[%s893_s1] sm:$0xff]  ;;  %634 = vmatprep.subr.msk.mxu0 %vm30_vm0, %v20_v0  ;;  %v29_v4 = vld [vmem:[%s893_s1 + $0x18] sm:$0xff]  ;;  %v796_v58 = vld [vmem:[%s894_s4 + $0x8] sm:$0xff] }
   0x3   :  { %636 = vmatprep.mubr.msk.f32.mxu0 %vm30_vm0, %v26_v1  ;;  %635 = vmatpush3.xpose.msk.msra.mxu0 %vm30_vm0, %v20_v0  ;;  %v789_v54 = vld [vmem:[%s894_s4 + $0x18] sm:$0xff]  ;;  %v801_v61 = vld [vmem:[%s894_s4 + $0x10] sm:$0xff]  ;;  %v807_v0 = vld [vmem:[%s894_s4] sm:$0xff] }
   0x6   :  { %637 = vmatmul.mubr.msk.f32.vlgmr.msra.gmra.mxu0 %vm30_vm0, %v27_v2 }
   0x7   :  { %639 = vmatprep.mubr.msk.f32.mxu0 %vm30_vm0, %v28_v3 }
   0xa   :  { %640 = vmatmul.mubr.msk.f32.gmra.mxu0 %vm30_vm0, %v29_v4 }
  0xc6   :  { %v758_v5 = vpop.f32.mrf.mxu0 }
  0xc7   :  { %v135_v6 = vsel %vm131_vm1, %v758_v5, 0.0  ;;  %v145_v18 = vmul.f32 %v758_v5, %v758_v5 }
  0xc8   :  { %136 = vadd.xlane.f32.xlu1 %v135_v6  ;;  %v762_v7 = vpop.f32.mrf.mxu0 }
  0xc9   :  { %v132_v15 = vsel %vm131_vm1, %v762_v7, 0.0  ;;  %v144_v16 = vmul.f32 %v762_v7, %v762_v7  ;;  %v151_v20 = vsel %vm131_vm1, %v145_v18, 0.0 }
  0xca   :  { %v764_v8 = vpop.f32.mrf.mxu0 }
  0xcb   :  { %v141_v9 = vsel %vm131_vm1, %v764_v8, 0.0  ;;  %v147_v10 = vmul.f32 %v764_v8, %v764_v8  ;;  %v148_v19 = vsel %vm131_vm1, %v144_v16, 0.0 }
  0xcc   :  { %142 = vadd.xlane.f32.xlu0 %v141_v9  ;;  %v770_v11 = vpop.f32.mrf.mxu0  ;;  %v707_v9 = vmov 2  }
  0xcd   :  { %v157_v12 = vsel %vm131_vm1, %v147_v10, 0.0  ;;  %v138_v13 = vsel %vm131_vm1, %v770_v11, 0.0  ;;  %v146_v14 = vmul.f32 %v770_v11, %v770_v11 }
  0xce   :  { %158 = vadd.xlane.f32.xlu1 %v157_v12 }
  0xcf   :  { %v154_v17 = vsel %vm131_vm1, %v146_v14, 0.0 }
  0xd0   :  { %139 = vadd.xlane.f32.xlu0 %v138_v13 }
  0xd2   :  { %133 = vadd.xlane.f32.xlu1 %v132_v15 }
  0xd4   :  { %155 = vadd.xlane.f32.xlu0 %v154_v17 }
  0xd6   :  { %149 = vadd.xlane.f32.xlu1 %v148_v19  ;;  %v272_v19 = vld [vmem:[%s895_s2] sm:$0xff] }
  0xd7   :  { %650 = vmatprep.mubr.msk.f32.mxu1 %vm276_vm2, %v272_v19 }
  0xd8   :  { %152 = vadd.xlane.f32.xlu0 %v151_v20 }
 0x151   :  { %v137_v22 = vpop.xlane.xlu1 %136 }
 0x152   :  { %v161_v35 = vmul.f32 0.125, %v137_v22 }
 0x154   :  { %v169_v44 = vmul.f32 %v161_v35, %v161_v35 }
 0x155   :  { %v143_v23 = vpop.xlane.xlu0 %142 }
 0x156   :  { %v163_v24 = vmul.f32 0.125, %v143_v23 }
 0x157   :  { %v159_v25 = vpop.xlane.xlu1 %158 }
 0x158   :  { %v171_v26 = vmul.f32 %v163_v24, %v163_v24  ;;  %v167_v27 = vmul.f32 0.125, %v159_v25 }
 0x159   :  { %v140_v28 = vpop.xlane.xlu0 %139 }
 0x15a   :  { %v175_v29 = vsub.f32 %v167_v27, %v171_v26  ;;  %v162_v30 = vmul.f32 0.125, %v140_v28 }
 0x15b   :  { %v134_v31 = vpop.xlane.xlu1 %133 }
 0x15c   :  { %v179_v32 = vmax.f32 %v175_v29, 0.0  ;;  %v160_v33 = vmul.f32 0.125, %v134_v31  ;;  %v170_v37 = vmul.f32 %v162_v30, %v162_v30 }
 0x15d   :  { %v156_v34 = vpop.xlane.xlu0 %155 }
 0x15e   :  { %v183_v36 = vadd.f32 1e-05, %v179_v32  ;;  %v166_v38 = vmul.f32 0.125, %v156_v34  ;;  %v168_v40 = vmul.f32 %v160_v33, %v160_v33 }
 0x15f   :  { %v150_v39 = vpop.xlane.xlu1 %149 }
 0x160   :  { %685 = vrsqrt.f32 %v183_v36  ;;  %v174_v41 = vsub.f32 %v166_v38, %v170_v37  ;;  %v164_v42 = vmul.f32 0.125, %v150_v39 }
 0x161   :  { %v153_v43 = vpop.xlane.xlu0 %152 }
 0x162   :  { %v178_v45 = vmax.f32 %v174_v41, 0.0  ;;  %v172_v46 = vsub.f32 %v164_v42, %v168_v40  ;;  %v165_v47 = vmul.f32 0.125, %v153_v43 }
 0x164   :  { %v176_v48 = vmax.f32 %v172_v46, 0.0  ;;  %v173_v49 = vsub.f32 %v165_v47, %v169_v44  ;;  %v182_v50 = vadd.f32 1e-05, %v178_v45 }
 0x166   :  { %v177_v51 = vmax.f32 %v173_v49, 0.0  ;;  %v180_v52 = vadd.f32 1e-05, %v176_v48  ;;  %687 = vrsqrt.f32 %v182_v50 }
 0x168   :  { %v181_v53 = vadd.f32 1e-05, %v177_v51 }
 0x16a   :  { %689 = vrsqrt.f32 %v181_v53 }
 0x16b   :  { %691 = vrsqrt.f32 %v180_v52 }
 0x16d   :  { %v686_v55 = vpop.eup %685 }
 0x16e   :  { %v191_v56 = vmul.f32 %v686_v55, %v789_v54 }
 0x170   :  { %v195_v57 = vmul.f32 %v191_v56, %v163_v24 }
 0x172   :  { %206 = vrot.lane.b32.xlu0 %v195_v57, %s706_s28 }
 0x173   :  { %v688_v59 = vpop.eup %687 }
 0x174   :  { %v190_v2 = vmul.f32 %v688_v59, %v801_v61 }
 0x176   :  { %233 = vperm.xlu0 %675, %v191_v56   ;;  %v194_v4 = vmul.f32 %v190_v2, %v162_v30 }
 0x177   :  { %v690_v60 = vpop.eup %689 }
 0x178   :  { %v189_v62 = vmul.f32 %v690_v60, %v796_v58  ;;  %v692_v63 = vpop.eup %691 }
 0x179   :  { %v188_v3 = vmul.f32 %v692_v63, %v807_v0 }
 0x17a   :  { %223 = vperm.xlu0 %675, %v189_v62   ;;  %v193_v1 = vmul.f32 %v189_v62, %v161_v35  ;;  %v708_v62 = vmov 4  }
 0x17b   :  { %v192_v6 = vmul.f32 %v188_v3, %v160_v33 }
 0x17c   :  { %202 = vrot.lane.b32.xlu1 %v193_v1, %s706_s28 }
 0x17e   :  { %218 = vperm.xlu0 %675, %v188_v3  }
 0x180   :  { %204 = vrot.lane.b32.xlu1 %v194_v4, %s706_s28 }
 0x182   :  { %678 = vset.pattern.permute.xlu0 %v707_v9 }
 0x184   :  { %200 = vrot.lane.b32.xlu1 %v192_v6, %s706_s28 }
 0x188   :  { %228 = vperm.xlu1 %676, %v190_v2  }
 0x18c   :  { %677 = vset.pattern.permute.xlu1 %v707_v9 }
 0x1e4   :  { %v207_v10 = vpop.permute.xlu0 %206 }
 0x1e5   :  { %v215_v12 = vsub.f32 %v789_v54, %v207_v10 }
 0x1e7   :  { %257 = vperm.xlu1 %677, %v215_v12  }
 0x1ee   :  { %v203_v13 = vpop.permute.xlu1 %202 }
 0x1ef   :  { %v213_v17 = vsub.f32 %v796_v58, %v203_v13 }
 0x1f1   :  { %v234_v20 = vpop.permute.xlu0 %233 }
 0x1f2   :  { %v205_v14 = vpop.permute.xlu1 %204  ;;  %v239_v22 = vmul.f32 %v764_v8, %v234_v20 }
 0x1f3   :  { %v214_v15 = vsub.f32 %v801_v61, %v205_v14 }
 0x1f5   :  { %252 = vperm.xlu1 %677, %v214_v15   ;;  %v224_v27 = vpop.permute.xlu0 %223 }
 0x1f6   :  { %v201_v16 = vpop.permute.xlu1 %200  ;;  %v237_v32 = vmul.f32 %v758_v5, %v224_v27  ;;  %v273_v5 = vld [vmem:[%s895_s2 + $0x8] sm:$0xff] }
 0x1f7   :  { %v212_v18 = vsub.f32 %v807_v0, %v201_v16 }
 0x1f9   :  { %242 = vperm.xlu0 %678, %v212_v18   ;;  %247 = vperm.xlu1 %677, %v213_v17   ;;  %v219_v29 = vpop.permute.xlu0 %218 }
 0x1fa   :  { %v236_v33 = vmul.f32 %v219_v29, %v762_v7  ;;  %v274_v7 = vld [vmem:[%s895_s2 + $0x10] sm:$0xff] }
 0x1fd   :  { %679 = vset.pattern.permute.xlu0 %v708_v62  ;;  %680 = vset.pattern.permute.xlu1 %v708_v62 }
 0x203   :  { %v229_v21 = vpop.permute.xlu1 %228 }
 0x204   :  { %v238_v28 = vmul.f32 %v229_v21, %v770_v11  ;;  %v275_v11 = vld [vmem:[%s895_s2 + $0x18] sm:$0xff] }
 0x262   :  { %v258_v23 = vpop.permute.xlu1 %257 }
 0x263   :  { %v263_v24 = vadd.f32 %v258_v23, %v239_v22 }
 0x265   :  { %v267_v25 = vmul.f32 0.01, %v263_v24 }
 0x267   :  { %v271_v26 = vmax.f32 %v263_v24, %v267_v25 }
 0x269   :  { %642 = vmatprep.subr.mxu1 %v271_v26 }
 0x26a   :  { %643 = vmatpush3.msra.mxu1 %v271_v26 }
 0x270   :  { %v253_v30 = vpop.permute.xlu1 %252 }
 0x271   :  { %v262_v31 = vadd.f32 %v253_v30, %v238_v28 }
 0x273   :  { %v266_v34 = vmul.f32 0.01, %v262_v31 }
 0x274   :  { %v248_v35 = vpop.permute.xlu1 %247  ;;  %v243_v36 = vpop.permute.xlu0 %242 }
 0x275   :  { %v270_v8 = vmax.f32 %v262_v31, %v266_v34  ;;  %v261_v37 = vadd.f32 %v248_v35, %v237_v32  ;;  %v260_v38 = vadd.f32 %v243_v36, %v236_v33 }
 0x277   :  { %v265_v39 = vmul.f32 0.01, %v261_v37  ;;  %v264_v40 = vmul.f32 0.01, %v260_v38  ;;  %644 = vmatprep.subr.mxu1 %v270_v8 }
 0x278   :  { %645 = vmatpush3.msra.mxu1 %v270_v8 }
 0x279   :  { %v269_v41 = vmax.f32 %v261_v37, %v265_v39  ;;  %v268_v42 = vmax.f32 %v260_v38, %v264_v40 }
 0x27b   :  { %646 = vmatprep.subr.mxu1 %v269_v41 }
 0x27c   :  { %647 = vmatpush3.msra.mxu1 %v269_v41 }
 0x27d   :  { %648 = vmatprep.subr.mxu1 %v268_v42 }
 0x27e   :  { %649 = vmatpush3.msra.mxu1 %v268_v42 }
 0x27f   :  { %651 = vmatmul.mubr.msk.f32.vlgmr.msra.gmra.mxu1 %vm276_vm2, %v273_v5 }
 0x280   :  { %653 = vmatprep.mubr.msk.f32.mxu1 %vm276_vm2, %v274_v7 }
 0x283   :  { %654 = vmatmul.mubr.msk.f32.gmra.mxu1 %vm276_vm2, %v275_v11 }
 0x33f   :  { %v838_v43 = vpop.f32.mrf.mxu1 }
 0x340   :  { %v377_v44 = vsel %vm131_vm1, %v838_v43, 0.0  ;;  %v387_v59 = vmul.f32 %v838_v43, %v838_v43 }
 0x341   :  { %378 = vadd.xlane.f32.xlu1 %v377_v44  ;;  %v842_v45 = vpop.f32.mrf.mxu1 }
 0x342   :  { %v374_v51 = vsel %vm131_vm1, %v842_v45, 0.0  ;;  %v386_v52 = vmul.f32 %v842_v45, %v842_v45  ;;  %v393_v60 = vsel %vm131_vm1, %v387_v59, 0.0 }
 0x343   :  { %v844_v46 = vpop.f32.mrf.mxu1 }
 0x344   :  { %v383_v47 = vsel %vm131_vm1, %v844_v46, 0.0  ;;  %v389_v50 = vmul.f32 %v844_v46, %v844_v46  ;;  %v390_v56 = vsel %vm131_vm1, %v386_v52, 0.0 }
 0x345   :  { %384 = vadd.xlane.f32.xlu1 %v383_v47  ;;  %v848_v48 = vpop.f32.mrf.mxu1  ;;  %v709_v47 = vmov 5  }
 0x346   :  { %v380_v49 = vsel %vm131_vm1, %v848_v48, 0.0  ;;  %v388_v53 = vmul.f32 %v848_v48, %v848_v48  ;;  %v399_v55 = vsel %vm131_vm1, %v389_v50, 0.0 }
 0x347   :  { %381 = vadd.xlane.f32.xlu0 %v380_v49 }
 0x348   :  { %v396_v57 = vsel %vm131_vm1, %v388_v53, 0.0 }
 0x349   :  { %375 = vadd.xlane.f32.xlu1 %v374_v51  ;;  %v710_v51 = vmov 0.0  }
 0x34a   :  { %656 = vmatprep.subr.mxu0 %v710_v51  ;;  %664 = vmatprep.mubr.msk.f32.mxu0 %vm711_vm3, %v710_v51 }
 0x34b   :  { %400 = vadd.xlane.f32.xlu0 %v399_v55 }
 0x34d   :  { %391 = vadd.xlane.f32.xlu1 %v390_v56 }
 0x34f   :  { %397 = vadd.xlane.f32.xlu0 %v396_v57 }
 0x353   :  { %394 = vadd.xlane.f32.xlu0 %v393_v60  ;;  %v712_v60 = vmov 6  }
 0x3ca   :  { %v379_v63 = vpop.xlane.xlu1 %378 }
 0x3cb   :  { %v403_v16 = vmul.f32 0.125, %v379_v63 }
 0x3cd   :  { %v411_v25 = vmul.f32 %v403_v16, %v403_v16 }
 0x3ce   :  { %v385_v1 = vpop.xlane.xlu1 %384 }
 0x3cf   :  { %v405_v3 = vmul.f32 0.125, %v385_v1 }
 0x3d0   :  { %v382_v2 = vpop.xlane.xlu0 %381 }
 0x3d1   :  { %v413_v9 = vmul.f32 %v405_v3, %v405_v3  ;;  %v404_v10 = vmul.f32 0.125, %v382_v2 }
 0x3d2   :  { %v376_v4 = vpop.xlane.xlu1 %375 }
 0x3d3   :  { %v402_v14 = vmul.f32 0.125, %v376_v4  ;;  %v412_v18 = vmul.f32 %v404_v10, %v404_v10 }
 0x3d4   :  { %v401_v6 = vpop.xlane.xlu0 %400 }
 0x3d5   :  { %v409_v12 = vmul.f32 0.125, %v401_v6  ;;  %v410_v22 = vmul.f32 %v402_v14, %v402_v14 }
 0x3d6   :  { %v392_v13 = vpop.xlane.xlu1 %391 }
 0x3d7   :  { %v417_v15 = vsub.f32 %v409_v12, %v413_v9  ;;  %v406_v20 = vmul.f32 0.125, %v392_v13 }
 0x3d8   :  { %v398_v17 = vpop.xlane.xlu0 %397 }
 0x3d9   :  { %v421_v19 = vmax.f32 %v417_v15, 0.0  ;;  %v408_v21 = vmul.f32 0.125, %v398_v17  ;;  %v414_v27 = vsub.f32 %v406_v20, %v410_v22 }
 0x3db   :  { %v425_v23 = vadd.f32 1e-05, %v421_v19  ;;  %v416_v24 = vsub.f32 %v408_v21, %v412_v18  ;;  %v418_v32 = vmax.f32 %v414_v27, 0.0 }
 0x3dc   :  { %v395_v26 = vpop.xlane.xlu0 %394 }
 0x3dd   :  { %693 = vrsqrt.f32 %v425_v23  ;;  %v420_v28 = vmax.f32 %v416_v24, 0.0  ;;  %v407_v29 = vmul.f32 0.125, %v395_v26  ;;  %v422_v35 = vadd.f32 1e-05, %v418_v32 }
 0x3df   :  { %v415_v30 = vsub.f32 %v407_v29, %v411_v25  ;;  %v424_v31 = vadd.f32 1e-05, %v420_v28 }
 0x3e1   :  { %v419_v33 = vmax.f32 %v415_v30, 0.0  ;;  %695 = vrsqrt.f32 %v424_v31 }
 0x3e3   :  { %v423_v34 = vadd.f32 1e-05, %v419_v33 }
 0x3e5   :  { %697 = vrsqrt.f32 %v423_v34 }
 0x3e6   :  { %699 = vrsqrt.f32 %v422_v35 }
 0x3ea   :  { %v694_v36 = vpop.eup %693 }
 0x3eb   :  { %v433_v8 = vmul.f32 %v694_v36, %v789_v54 }
 0x3ed   :  { %v437_v37 = vmul.f32 %v433_v8, %v405_v3 }
 0x3ee   :  { %v696_v38 = vpop.eup %695 }
 0x3ef   :  { %448 = vrot.lane.b32.xlu0 %v437_v37, %s706_s28  ;;  %v432_v42 = vmul.f32 %v696_v38, %v801_v61 }
 0x3f1   :  { %v436_v11 = vmul.f32 %v432_v42, %v404_v10 }
 0x3f2   :  { %v698_v39 = vpop.eup %697 }
 0x3f3   :  { %475 = vperm.xlu0 %679, %v433_v8   ;;  %v431_v40 = vmul.f32 %v698_v39, %v796_v58  ;;  %v700_v5 = vpop.eup %699 }
 0x3f4   :  { %v430_v7 = vmul.f32 %v700_v5, %v807_v0 }
 0x3f5   :  { %v435_v41 = vmul.f32 %v431_v40, %v403_v16 }
 0x3f6   :  { %v434_v44 = vmul.f32 %v430_v7, %v402_v14 }
 0x3f7   :  { %465 = vperm.xlu0 %679, %v431_v40   ;;  %444 = vrot.lane.b32.xlu1 %v435_v41, %s706_s28 }
 0x3fb   :  { %460 = vperm.xlu0 %679, %v430_v7   ;;  %446 = vrot.lane.b32.xlu1 %v436_v11, %s706_s28 }
 0x3ff   :  { %442 = vrot.lane.b32.xlu1 %v434_v44, %s706_s28  ;;  %682 = vset.pattern.permute.xlu0 %v709_v47 }
 0x403   :  { %470 = vperm.xlu1 %680, %v432_v42  }
 0x407   :  { %681 = vset.pattern.permute.xlu1 %v709_v47 }
 0x461   :  { %v449_v49 = vpop.permute.xlu0 %448 }
 0x462   :  { %v457_v50 = vsub.f32 %v789_v54, %v449_v49  ;;  %v25_v54 = vld [vmem:[%s894_s4] sm:$0x7] }
 0x464   :  { %499 = vperm.xlu1 %681, %v457_v50  }
 0x469   :  { %v445_v52 = vpop.permute.xlu1 %444 }
 0x46a   :  { %v455_v57 = vsub.f32 %v796_v58, %v445_v52 }
 0x46d   :  { %v447_v53 = vpop.permute.xlu1 %446 }
 0x46e   :  { %v456_v55 = vsub.f32 %v801_v61, %v447_v53  ;;  %v476_v62 = vpop.permute.xlu0 %475 }
 0x46f   :  { %v481_v63 = vmul.f32 %v844_v46, %v476_v62 }
 0x470   :  { %494 = vperm.xlu1 %681, %v456_v55  }
 0x471   :  { %v443_v56 = vpop.permute.xlu1 %442 }
 0x472   :  { %v454_v59 = vsub.f32 %v807_v0, %v443_v56  ;;  %v466_v3 = vpop.permute.xlu0 %465 }
 0x473   :  { %v479_v12 = vmul.f32 %v838_v43, %v466_v3 }
 0x474   :  { %484 = vperm.xlu0 %682, %v454_v59   ;;  %489 = vperm.xlu1 %681, %v455_v57  }
 0x476   :  { %v461_v6 = vpop.permute.xlu0 %460 }
 0x477   :  { %v478_v13 = vmul.f32 %v461_v6, %v842_v45 }
 0x478   :  { %683 = vset.pattern.permute.xlu1 %v712_v60  ;;  %684 = vset.pattern.permute.xlu0 %v712_v60 }
 0x479   :  { %517 = vperm.xlu1 %683, %v25_v54  }
 0x47e   :  { %v471_v61 = vpop.permute.xlu1 %470 }
 0x47f   :  { %v480_v4 = vmul.f32 %v471_v61, %v848_v48  ;;  %v514_v48 = vld [vmem:[%s896_s3] sm:$0x7] }
 0x4df   :  { %v500_v1 = vpop.permute.xlu1 %499 }
 0x4e0   :  { %v505_v58 = vadd.f32 %v500_v1, %v481_v63 }
 0x4e2   :  { %v509_v2 = vmul.f32 0.01, %v505_v58 }
 0x4e4   :  { %v513_v0 = vmax.f32 %v505_v58, %v509_v2 }
 0x4e6   :  { %657 = vmatpush3.msra.mxu0 %v513_v0 }
 0x4e7   :  { %658 = vmatprep.subr.mxu0 %v710_v51 }
 0x4eb   :  { %v495_v9 = vpop.permute.xlu1 %494 }
 0x4ec   :  { %v504_v10 = vadd.f32 %v495_v9, %v480_v4 }
 0x4ee   :  { %v508_v14 = vmul.f32 0.01, %v504_v10 }
 0x4ef   :  { %v490_v15 = vpop.permute.xlu1 %489  ;;  %v485_v16 = vpop.permute.xlu0 %484 }
 0x4f0   :  { %v512_v46 = vmax.f32 %v504_v10, %v508_v14  ;;  %v503_v17 = vadd.f32 %v490_v15, %v479_v12  ;;  %v502_v18 = vadd.f32 %v485_v16, %v478_v13 }
 0x4f2   :  { %v507_v19 = vmul.f32 0.01, %v503_v17  ;;  %v506_v20 = vmul.f32 0.01, %v502_v18  ;;  %659 = vmatpush3.msra.mxu0 %v512_v46 }
 0x4f3   :  { %660 = vmatprep.subr.mxu0 %v710_v51 }
 0x4f4   :  { %v511_v21 = vmax.f32 %v503_v17, %v507_v19  ;;  %v510_v22 = vmax.f32 %v502_v18, %v506_v20  ;;  %v518_v43 = vpop.permute.xlu1 %517 }
 0x4f6   :  { %661 = vmatpush3.msra.mxu0 %v511_v21 }
 0x4f7   :  { %662 = vmatprep.subr.mxu0 %v710_v51 }
 0x4f8   :  { %663 = vmatpush3.msra.mxu0 %v510_v22 }
 0x4f9   :  { %665 = vmatmul.mubr.msk.f32.vlgmr.msra.gmra.mxu0 %vm276_vm2, %v514_v48 }
 0x5b9   :  { %v589_v45 = vpop.f32.mrf.mxu0 }
 0x5ba   :  { %v590_v23 = vadd.f32 %v589_v45, %v518_v43 }
 0x5bb   :  { %v666_v24 = vpop.f32.mrf.mxu0 }
 0x5bc   :  { %v615_v25 = vmul.f32 -1.442695, %v590_v23 }
 0x5be   :  { %701 = vpow2.f32 %v615_v25 }
 0x5cb   :  { %v702_v26 = vpop.eup %701 }
 0x5cc   :  { %v596_v27 = vadd.f32 1.0, %v702_v26 }
 0x5ce   :  { %703 = vrcp.f32 %v596_v27 }
 0x5db   :  { %v704_v28 = vpop.eup %703 }
 0x5dc   :  { %600 = vst.msk [vmem:[%s897_s5] sm:$0x7] %vm599_vm4, %v704_v28 }

</bundles_post_ra>
